<compile_context>
chip_gen: v7x
topology: tpu7x:2x2x1
jax: 0.10.0
libtpu: 0.0.40
codegen_flags: <defaults>
</compile_context>

<pallas_src>
import functools

import jax
import jax.numpy as jnp
from jax import lax
from jax.experimental import pallas as pl
from jax.experimental.pallas import tpu as pltpu


def _bert_embedding_kernel(ids_ref, tt_ids_ref,            # scalar prefetch (SMEM), shape (N,)
                           tok_hbm, tt_hbm,                 # embedding tables, left in HBM
                           pos_ref, gamma_ref, beta_ref,    # VMEM tiles
                           out_ref,                         # VMEM output tile (TILE_N, D)
                           tok_buf, tt_buf, sems,           # scratch: gather buffers + DMA sems
                           *, n_sub):
    tile_n = out_ref.shape[0]
    sub = tile_n // n_sub
    base = pl.program_id(0) * tile_n

    # Issue one row DMA per token per table (real gather).  Ids are read from
    # SMEM before any DMA wait (keeps scalar loads off the wait path).
    @pl.loop(0, tile_n)
    def _(r):
        tid = ids_ref[base + r]
        ttid = tt_ids_ref[base + r]
        pltpu.make_async_copy(tok_hbm.at[pl.ds(tid, 1), :],
                              tok_buf.at[pl.ds(r, 1), :],
                              sems.at[0, r]).start()
        pltpu.make_async_copy(tt_hbm.at[pl.ds(ttid, 1), :],
                              tt_buf.at[pl.ds(r, 1), :],
                              sems.at[1, r]).start()

    gamma = gamma_ref[...].astype(jnp.float32)   # hoisted: loaded once per step
    beta = beta_ref[...].astype(jnp.float32)
    inv_d = 1.0 / out_ref.shape[-1]

    # Wait + compute in sub-tiles: compute on sub-tile j overlaps the transfers
    # of sub-tiles > j (stateless across grid steps -> megacore-safe).
    for j in range(n_sub):
        lo = j * sub   # static Python int -> static, sublane-aligned slices

        @pl.loop(lo, lo + sub)
        def _(r):
            pltpu.make_async_copy(tok_hbm.at[pl.ds(0, 1), :],
                                  tok_buf.at[pl.ds(r, 1), :],
                                  sems.at[0, r]).wait()
            pltpu.make_async_copy(tt_hbm.at[pl.ds(0, 1), :],
                                  tt_buf.at[pl.ds(r, 1), :],
                                  sems.at[1, r]).wait()

        emb = (tok_buf[pl.ds(lo, sub), :].astype(jnp.float32)
               + tt_buf[pl.ds(lo, sub), :].astype(jnp.float32)
               + pos_ref[pl.ds(lo, sub), :].astype(jnp.float32))

        # LayerNorm over hidden axis, eps=1e-12 (fused single-pass statistics).
        mean = jnp.sum(emb, axis=-1, keepdims=True) * inv_d
        mean_sq = jnp.sum(emb * emb, axis=-1, keepdims=True) * inv_d
        var = jnp.maximum(mean_sq - mean * mean, 0.0)
        normed = (emb - mean) * lax.rsqrt(var + 1e-12)

        out_ref[pl.ds(lo, sub), :] = (normed * gamma + beta).astype(out_ref.dtype)
    # TODO(synk): nn.Dropout(0.1) is identity here (eval-mode semantics).


def _pick_row_tile(seq_len, cap=256):
    """Largest divisor of seq_len <= cap, preferring sublane-aligned multiples of 8."""
    best, best8 = 1, None
    for t in range(1, min(seq_len, cap) + 1):
        if seq_len % t == 0:
            best = t
            if t % 8 == 0:
                best8 = t
    return best8 if best8 is not None else best


def _pick_sub_tiles(tile_n):
    """Sub-tile count for wait/compute overlap; sub-tiles stay multiples of 8."""
    for n_sub in (4, 2):
        if tile_n % n_sub == 0 and (tile_n // n_sub) % 8 == 0:
            return n_sub
    return 1


def bert_embedding(input_ids, token_type_ids, params, *, row_tile=None):
    """input_ids, token_type_ids: (B, S) int32 -> (B, S, D) float32."""
    B, S = input_ids.shape
    tok_tab = params["token_embedding"]          # (V, D) -- stays in HBM
    tt_tab = params["token_type_embeddings"]     # (V, D) -- stays in HBM (module sizes it with vocab)
    pos_tab = params["position_embeddings"]      # (max_seq, D), small
    gamma = params["ln_gamma"].reshape(1, -1)
    beta = params["ln_beta"].reshape(1, -1)
    D = tok_tab.shape[1]
    N = B * S

    tile_n = row_tile if row_tile is not None else _pick_row_tile(S)
    assert S % tile_n == 0 and N % tile_n == 0
    n_sub = _pick_sub_tiles(tile_n)
    pos_blocks_per_seq = S // tile_n

    ids = input_ids.reshape(N).astype(jnp.int32)
    tts = token_type_ids.reshape(N).astype(jnp.int32)

    # Position ids are arange(S) broadcast over batch => block index is a pure
    # function of the grid step (no gather needed).
    def pos_map(i, ids_ref, tts_ref):
        return (lax.rem(i, pos_blocks_per_seq), 0)

    grid_spec = pltpu.PrefetchScalarGridSpec(
        num_scalar_prefetch=2,
        grid=(N // tile_n,),
        in_specs=[
            pl.BlockSpec(memory_space=pl.ANY),      # token table: HBM, DMA-gathered
            pl.BlockSpec(memory_space=pl.ANY),      # token-type table: HBM, DMA-gathered
            pl.BlockSpec((tile_n, D), pos_map),     # position rows: auto-pipelined
            pl.BlockSpec((1, D), lambda i, ids_ref, tts_ref: (0, 0)),  # gamma
            pl.BlockSpec((1, D), lambda i, ids_ref, tts_ref: (0, 0)),  # beta
        ],
        out_specs=pl.BlockSpec((tile_n, D), lambda i, ids_ref, tts_ref: (i, 0)),
        scratch_shapes=[
            pltpu.VMEM((tile_n, D), tok_tab.dtype),
            pltpu.VMEM((tile_n, D), tt_tab.dtype),
            pltpu.SemaphoreType.DMA((2, tile_n)),
        ],
    )

    out = pl.pallas_call(
        functools.partial(_bert_embedding_kernel, n_sub=n_sub),
        out_shape=jax.ShapeDtypeStruct((N, D), jnp.float32),
        grid_spec=grid_spec,
        compiler_params=pltpu.CompilerParams(
            dimension_semantics=("parallel",),      # rows are independent -> megacore split
        ),
    )(ids, tts, tok_tab, tt_tab, pos_tab, gamma, beta)

    return out.reshape(B, S, D)


if __name__ == "__main__":
    vocab_size = 64
    dim_model = 32
    max_seq_length = 16
    B, S = 2, 8

    key = jax.random.PRNGKey(0)
    k1, k2, k3, k4 = jax.random.split(key, 4)

    # Deterministic synthetic parameters (same shapes as the nn.Module).
    params = {
        "token_embedding": 0.02 * jax.random.normal(k1, (vocab_size, dim_model), jnp.float32),
        "position_embeddings": 0.02 * jax.random.normal(k2, (max_seq_length, dim_model), jnp.float32),
        # Note: the reference module sizes token_type_embeddings with vocab_size.
        "token_type_embeddings": 0.02 * jax.random.normal(k3, (vocab_size, dim_model), jnp.float32),
        "ln_gamma": jnp.ones((dim_model,), jnp.float32),
        "ln_beta": jnp.zeros((dim_model,), jnp.float32),
    }

    input_ids = jax.random.randint(k4, (B, S), 0, vocab_size, dtype=jnp.int32)
    token_type_ids = jnp.zeros((B, S), jnp.int32)   # default (None) path in forward()

    out = bert_embedding(input_ids, token_type_ids, params)
    out = jax.block_until_ready(out)

    # Pure-JAX reference for correctness.
    tok = params["token_embedding"][input_ids]
    pos = params["position_embeddings"][jnp.arange(S)][None, :, :]
    tt = params["token_type_embeddings"][token_type_ids]
    emb = tok + pos + tt
    mean = emb.mean(-1, keepdims=True)
    var = ((emb - mean) ** 2).mean(-1, keepdims=True)
    ref = (emb - mean) / jnp.sqrt(var + 1e-12) * params["ln_gamma"] + params["ln_beta"]

    assert out.shape == (B, S, dim_model)
    assert out.dtype == jnp.float32
    err = float(jnp.max(jnp.abs(out - ref)))
    assert err < 1e-4, f"max abs error {err}"
    print("KERNEL_OK")
</pallas_src>

<mosaic_0001>
module attributes {stable_mosaic.version = 11 : i64} {
  func.func @_bert_embedding_kernel(%arg0: i32, %arg1: memref<16xi32, #tpu.memory_space<smem>>, %arg2: memref<16xi32, #tpu.memory_space<smem>>, %arg3: memref<64x32xf32, #tpu.memory_space<any>>, %arg4: memref<64x32xf32, #tpu.memory_space<any>>, %arg5: memref<8x32xf32, #tpu.memory_space<vmem>>, %arg6: memref<1x32xf32, #tpu.memory_space<vmem>>, %arg7: memref<1x32xf32, #tpu.memory_space<vmem>>, %arg8: memref<8x32xf32, #tpu.memory_space<vmem>>, %arg9: memref<8x32xf32, #tpu.memory_space<vmem>>, %arg10: memref<8x32xf32, #tpu.memory_space<vmem>>, %arg11: memref<2x8x!tpu.dma_semaphore, #tpu.memory_space<semaphore_mem>>) attributes {dimension_semantics = [#tpu.dimension_semantics<parallel>], iteration_bounds = array<i64: 2>, scalar_prefetch = 2 : i64, scratch_operands = 3 : i64, tpu.core_type = #tpu.core_type<tc>, window_params = [{}, {}, {transform_indices = @transform_2, window_bounds = array<i64: 8, 32>}, {pipeline_mode = #tpu.pipeline_mode<synchronous>, transform_indices = @transform_3, window_bounds = array<i64: 1, 32>}, {pipeline_mode = #tpu.pipeline_mode<synchronous>, transform_indices = @transform_4, window_bounds = array<i64: 1, 32>}, {transform_indices = @transform_5, window_bounds = array<i64: 8, 32>}]} {
    %c8_i32 = arith.constant 8 : i32
    %0 = arith.muli %arg0, %c8_i32 : i32
    %c0_i32 = arith.constant 0 : i32
    %c8_i32_0 = arith.constant 8 : i32
    %1 = arith.addi %c0_i32, %c8_i32_0 : i32
    %c1_i32 = arith.constant 1 : i32
    scf.for %arg12 = %c0_i32 to %1 step %c1_i32  : i32 {
      %c1_i32_22 = arith.constant 1 : i32
      %35 = arith.muli %arg12, %c1_i32_22 : i32
      %c0_i32_23 = arith.constant 0 : i32
      %36 = arith.addi %c0_i32_23, %35 : i32
      %37 = arith.addi %0, %36 : i32
      %38 = arith.index_cast %37 : i32 to index
      %39 = memref.load %arg1[%38] : memref<16xi32, #tpu.memory_space<smem>>
      %40 = arith.addi %0, %36 : i32
      %41 = arith.index_cast %40 : i32 to index
      %42 = memref.load %arg2[%41] : memref<16xi32, #tpu.memory_space<smem>>
      %c0_i32_24 = arith.constant 0 : i32
      %c0_i32_25 = arith.constant 0 : i32
      %43 = tpu.memref_slice %arg3[%39, %c0_i32_25] : memref<64x32xf32, #tpu.memory_space<any>> -> memref<1x32xf32, #tpu.memory_space<any>>
      %c0_i32_26 = arith.constant 0 : i32
      %44 = tpu.memref_slice %arg9[%36, %c0_i32_26] : memref<8x32xf32, #tpu.memory_space<vmem>> -> memref<1x32xf32, #tpu.memory_space<vmem>>
      %45 = tpu.memref_slice %arg11[%c0_i32_24, %36] : memref<2x8x!tpu.dma_semaphore, #tpu.memory_space<semaphore_mem>> -> memref<1x1x!tpu.dma_semaphore, #tpu.memory_space<semaphore_mem>>
      %46 = tpu.memref_squeeze %45 : memref<1x1x!tpu.dma_semaphore, #tpu.memory_space<semaphore_mem>> -> memref<!tpu.dma_semaphore, #tpu.memory_space<semaphore_mem>>
      tpu.enqueue_dma source(%43 : memref<1x32xf32, #tpu.memory_space<any>>) target(%44 : memref<1x32xf32, #tpu.memory_space<vmem>>) target_semaphore(%46 : memref<!tpu.dma_semaphore, #tpu.memory_space<semaphore_mem>>)
      %c1_i32_27 = arith.constant 1 : i32
      %c0_i32_28 = arith.constant 0 : i32
      %47 = tpu.memref_slice %arg4[%42, %c0_i32_28] : memref<64x32xf32, #tpu.memory_space<any>> -> memref<1x32xf32, #tpu.memory_space<any>>
      %c0_i32_29 = arith.constant 0 : i32
      %48 = tpu.memref_slice %arg10[%36, %c0_i32_29] : memref<8x32xf32, #tpu.memory_space<vmem>> -> memref<1x32xf32, #tpu.memory_space<vmem>>
      %49 = tpu.memref_slice %arg11[%c1_i32_27, %36] : memref<2x8x!tpu.dma_semaphore, #tpu.memory_space<semaphore_mem>> -> memref<1x1x!tpu.dma_semaphore, #tpu.memory_space<semaphore_mem>>
      %50 = tpu.memref_squeeze %49 : memref<1x1x!tpu.dma_semaphore, #tpu.memory_space<semaphore_mem>> -> memref<!tpu.dma_semaphore, #tpu.memory_space<semaphore_mem>>
      tpu.enqueue_dma source(%47 : memref<1x32xf32, #tpu.memory_space<any>>) target(%48 : memref<1x32xf32, #tpu.memory_space<vmem>>) target_semaphore(%50 : memref<!tpu.dma_semaphore, #tpu.memory_space<semaphore_mem>>)
    }
    %c8_i32_1 = arith.constant 8 : i32
    %c0 = arith.constant 0 : index
    %c0_2 = arith.constant 0 : index
    %2 = vector.load %arg6[%c0, %c0_2] : memref<1x32xf32, #tpu.memory_space<vmem>>, vector<1x32xf32>
    %c0_3 = arith.constant 0 : index
    %c0_4 = arith.constant 0 : index
    %3 = vector.load %arg7[%c0_3, %c0_4] : memref<1x32xf32, #tpu.memory_space<vmem>>, vector<1x32xf32>
    %c0_i32_5 = arith.constant 0 : i32
    %c8_i32_6 = arith.constant 8 : i32
    %4 = arith.addi %c0_i32_5, %c8_i32_6 : i32
    %c1_i32_7 = arith.constant 1 : i32
    scf.for %arg12 = %c0_i32_5 to %4 step %c1_i32_7  : i32 {
      %c1_i32_22 = arith.constant 1 : i32
      %35 = arith.muli %arg12, %c1_i32_22 : i32
      %c0_i32_23 = arith.constant 0 : i32
      %36 = arith.addi %c0_i32_23, %35 : i32
      %c0_i32_24 = arith.constant 0 : i32
      %c0_i32_25 = arith.constant 0 : i32
      %c0_i32_26 = arith.constant 0 : i32
      %37 = tpu.memref_slice %arg3[%c0_i32_25, %c0_i32_26] : memref<64x32xf32, #tpu.memory_space<any>> -> memref<1x32xf32, #tpu.memory_space<any>>
      %c0_i32_27 = arith.constant 0 : i32
      %38 = tpu.memref_slice %arg9[%36, %c0_i32_27] : memref<8x32xf32, #tpu.memory_space<vmem>> -> memref<1x32xf32, #tpu.memory_space<vmem>>
      %39 = tpu.memref_slice %arg11[%c0_i32_24, %36] : memref<2x8x!tpu.dma_semaphore, #tpu.memory_space<semaphore_mem>> -> memref<1x1x!tpu.dma_semaphore, #tpu.memory_space<semaphore_mem>>
      %40 = tpu.memref_squeeze %39 : memref<1x1x!tpu.dma_semaphore, #tpu.memory_space<semaphore_mem>> -> memref<!tpu.dma_semaphore, #tpu.memory_space<semaphore_mem>>
      tpu.wait_dma2 semaphore(%40 : memref<!tpu.dma_semaphore, #tpu.memory_space<semaphore_mem>>) src(%37 : memref<1x32xf32, #tpu.memory_space<any>>) dst(%38 : memref<1x32xf32, #tpu.memory_space<vmem>>)
      %c1_i32_28 = arith.constant 1 : i32
      %c0_i32_29 = arith.constant 0 : i32
      %c0_i32_30 = arith.constant 0 : i32
      %41 = tpu.memref_slice %arg4[%c0_i32_29, %c0_i32_30] : memref<64x32xf32, #tpu.memory_space<any>> -> memref<1x32xf32, #tpu.memory_space<any>>
      %c0_i32_31 = arith.constant 0 : i32
      %42 = tpu.memref_slice %arg10[%36, %c0_i32_31] : memref<8x32xf32, #tpu.memory_space<vmem>> -> memref<1x32xf32, #tpu.memory_space<vmem>>
      %43 = tpu.memref_slice %arg11[%c1_i32_28, %36] : memref<2x8x!tpu.dma_semaphore, #tpu.memory_space<semaphore_mem>> -> memref<1x1x!tpu.dma_semaphore, #tpu.memory_space<semaphore_mem>>
      %44 = tpu.memref_squeeze %43 : memref<1x1x!tpu.dma_semaphore, #tpu.memory_space<semaphore_mem>> -> memref<!tpu.dma_semaphore, #tpu.memory_space<semaphore_mem>>
      tpu.wait_dma2 semaphore(%44 : memref<!tpu.dma_semaphore, #tpu.memory_space<semaphore_mem>>) src(%41 : memref<1x32xf32, #tpu.memory_space<any>>) dst(%42 : memref<1x32xf32, #tpu.memory_space<vmem>>)
    }
    %c8_i32_8 = arith.constant 8 : i32
    %c0_9 = arith.constant 0 : index
    %c0_10 = arith.constant 0 : index
    %5 = vector.load %arg9[%c0_9, %c0_10] : memref<8x32xf32, #tpu.memory_space<vmem>>, vector<8x32xf32>
    %c0_11 = arith.constant 0 : index
    %c0_12 = arith.constant 0 : index
    %6 = vector.load %arg10[%c0_11, %c0_12] : memref<8x32xf32, #tpu.memory_space<vmem>>, vector<8x32xf32>
    %7 = arith.addf %5, %6 : vector<8x32xf32>
    %c0_13 = arith.constant 0 : index
    %c0_14 = arith.constant 0 : index
    %8 = vector.load %arg5[%c0_13, %c0_14] : memref<8x32xf32, #tpu.memory_space<vmem>>, vector<8x32xf32>
    %9 = arith.addf %7, %8 : vector<8x32xf32>
    %cst = arith.constant dense<0.000000e+00> : vector<8xf32>
    %10 = vector.multi_reduction <add>, %9, %cst [1] : vector<8x32xf32> to vector<8xf32>
    %11 = vector.shape_cast %10 : vector<8xf32> to vector<8x1xf32>
    %cst_15 = arith.constant 3.125000e-02 : f32
    %12 = vector.broadcast %cst_15 : f32 to vector<8x1xf32>
    %13 = arith.mulf %11, %12 : vector<8x1xf32>
    %14 = arith.mulf %9, %9 : vector<8x32xf32>
    %cst_16 = arith.constant dense<0.000000e+00> : vector<8xf32>
    %15 = vector.multi_reduction <add>, %14, %cst_16 [1] : vector<8x32xf32> to vector<8xf32>
    %16 = vector.shape_cast %15 : vector<8xf32> to vector<8x1xf32>
    %cst_17 = arith.constant 3.125000e-02 : f32
    %17 = vector.broadcast %cst_17 : f32 to vector<8x1xf32>
    %18 = arith.mulf %16, %17 : vector<8x1xf32>
    %19 = arith.mulf %13, %13 : vector<8x1xf32>
    %20 = arith.subf %18, %19 : vector<8x1xf32>
    %cst_18 = arith.constant 0.000000e+00 : f32
    %21 = vector.broadcast %cst_18 : f32 to vector<8x1xf32>
    %22 = arith.maximumf %20, %21 : vector<8x1xf32>
    %23 = vector.broadcast %13 : vector<8x1xf32> to vector<8x32xf32>
    %24 = arith.subf %9, %23 : vector<8x32xf32>
    %cst_19 = arith.constant 9.99999996E-13 : f32
    %25 = vector.broadcast %cst_19 : f32 to vector<8x1xf32>
    %26 = arith.addf %22, %25 : vector<8x1xf32>
    %27 = math.rsqrt %26 : vector<8x1xf32>
    %28 = vector.broadcast %27 : vector<8x1xf32> to vector<8x32xf32>
    %29 = arith.mulf %24, %28 : vector<8x32xf32>
    %30 = vector.broadcast %2 : vector<1x32xf32> to vector<8x32xf32>
    %31 = arith.mulf %29, %30 : vector<8x32xf32>
    %32 = vector.broadcast %3 : vector<1x32xf32> to vector<8x32xf32>
    %33 = arith.addf %31, %32 : vector<8x32xf32>
    %c0_20 = arith.constant 0 : index
    %c0_21 = arith.constant 0 : index
    %34 = vector.load %arg8[%c0_20, %c0_21] : memref<8x32xf32, #tpu.memory_space<vmem>>, vector<8x32xf32>
    tpu.vector_store %arg8[%c0_20, %c0_21], %33 {strides = array<i32>} : memref<8x32xf32, #tpu.memory_space<vmem>>, vector<8x32xf32>,
    return
  }
  func.func @transform_2(%arg0: i32, %arg1: memref<16xi32, #tpu.memory_space<smem>>, %arg2: memref<16xi32, #tpu.memory_space<smem>>) -> (i32, i32) {
    %c1_i32 = arith.constant 1 : i32
    %0 = arith.remsi %arg0, %c1_i32 : i32
    %c0_i32 = arith.constant 0 : i32
    %c0_i32_0 = arith.constant 0 : i32
    return %0, %c0_i32 : i32, i32
  }
  func.func @transform_3(%arg0: i32, %arg1: memref<16xi32, #tpu.memory_space<smem>>, %arg2: memref<16xi32, #tpu.memory_space<smem>>) -> (i32, i32) {
    %c0_i32 = arith.constant 0 : i32
    %c0_i32_0 = arith.constant 0 : i32
    %c0_i32_1 = arith.constant 0 : i32
    return %c0_i32, %c0_i32_0 : i32, i32
  }
  func.func @transform_4(%arg0: i32, %arg1: memref<16xi32, #tpu.memory_space<smem>>, %arg2: memref<16xi32, #tpu.memory_space<smem>>) -> (i32, i32) {
    %c0_i32 = arith.constant 0 : i32
    %c0_i32_0 = arith.constant 0 : i32
    %c0_i32_1 = arith.constant 0 : i32
    return %c0_i32, %c0_i32_0 : i32, i32
  }
  func.func @transform_5(%arg0: i32, %arg1: memref<16xi32, #tpu.memory_space<smem>>, %arg2: memref<16xi32, #tpu.memory_space<smem>>) -> (i32, i32) {
    %c0_i32 = arith.constant 0 : i32
    %c0_i32_0 = arith.constant 0 : i32
    return %arg0, %c0_i32 : i32, i32
  }
}

</mosaic_0001>

<bundles_post_ra>
// kernel: tpu_custom_call.1
= control target key start
LH: loop header
LB: loop body
LE: loop exit
PB: predicated region body
PF: predicated region fallthrough
CT: control target
= control target key end

     0   :  { %s903_s0 = inlined_call_operand.vmem [shape: s32[16], index: 0, kind: input, shape index: {}]   ;;  %s904_s2 = inlined_call_operand.vmem [shape: f32[64,32], index: 2, kind: input, shape index: {}]   ;;  %s905_s3 = inlined_call_operand.vmem [shape: f32[64,32], index: 3, kind: input, shape index: {}]   ;;  %s906_s4 = inlined_call_operand.vmem [shape: f32[16,32], index: 4, kind: input, shape index: {}]   ;;  %s907_s5 = inlined_call_operand.vmem [shape: f32[1,32], index: 5, kind: input, shape index: {}]   ;;  %s908_s6 = inlined_call_operand.vmem [shape: f32[1,32], index: 6, kind: input, shape index: {}]   ;;  %s909_s7 = inlined_call_operand.hbm [shape: f32[16,32], index: 7, kind: output, shape index: {}]   ;;  %s910_s1 = inlined_call_operand.vmem [shape: s32[16], index: 1, kind: input, shape index: {}]  }
   0x1   :  { %s12_s26 = sshll.u32 %s903_s0, 4  ;;  %s16_s29 = sshll.u32 %s910_s1, 4  ;;  %s13_s26 = int_to_ptr.vmem [resolvable:$true] %s12_s26  ;;  %s17_s29 = int_to_ptr.vmem [resolvable:$true] %s16_s29 }
   0x2   :  { %s619_s30 = scalar_lea.vmem %s13_s26, 16  ;;  %p624_p1 = scmp.lt.s32.totalorder %s13_s26, %s13_s26 }
   0x3   :  { %p620_p0 = scmp.ne.s32.totalorder %s13_s26, %s619_s30  ;;  %p625_p2 = scmp.lt.s32.totalorder %s619_s30, %s619_s30 }
   0x5   :  { %p626_p3 = por %p625_p2, %p624_p1 }
   0x7   :  { %p627_p4 = pnand %p626_p3, %p620_p0 }
   0x9   :  { %630 = shalt.err (!%p627_p4)  }
   0xa   :  { %s729_s8 = smov [#allocation6]   ;;  %s631_s9 = scalar_lea.vmem %s17_s29, 16 }
   0xb   :  { %15 = dma.vmem_to_smem %s13_s26, 16, %s729_s8, [#allocation5] }
   0xc   :  { %p632_p5 = scmp.ne.s32.totalorder %s17_s29, %s631_s9  ;;  %p636_p6 = scmp.lt.s32.totalorder %s17_s29, %s17_s29 }
   0xd   :  { %p637_p7 = scmp.lt.s32.totalorder %s631_s9, %s631_s9 }
   0xf   :  { %p638_p8 = por %p637_p7, %p636_p6 }
  0x11   :  { %p639_p9 = pnand %p638_p8, %p632_p5 }
  0x13   :  { %642 = shalt.err (!%p639_p9)  }
  0x14   :  { %s730_s0 = smov [#allocation7]  }
  0x15   :  { %19 = dma.vmem_to_smem %s17_s29, 16, %s730_s0, [#allocation5] }
  0x16   :  { %695 = dma.done.wait [#allocation5], 32 }
  0x17   :  { %696 = vsyncadd [#allocation5], 4294967264 }
  0x18   :  { %21 = sfence }
  0x19   :  { %22 = vsyncpa [#allocation9], 0 }
  0x1a   :  { %24 = vsyncpa [#allocation9 + $0x1], 0  ;;  %s778_s1 = smov 0   ;;  %s780_s10 = smov 0  }
  0x1b   :  { %s782_s11 = smov 0   ;;  %s784_s12 = smov 0  }
  0x1c LB: > { %s799_s13 = sadd.s32 4294967295, %s719_s12   ;;  %s533_s14 = sadd.s32 4294967294, %s719_s12   ;;  %s719_s12 = sphi %s784_s12, %s920_s12   ;;  %s715_s11 = sphi %s782_s11, %s919_s11   ;;  %s711_s10 = sphi %s780_s10, %s918_s10   ;;  %s707_s1 = sphi %s778_s1, %s917_s1  }
  0x1d   : > { %s803_s15 = sadd.s32 1, %s719_s12   ;;  %s100_s16 = sadd.s32 1, %s715_s11 }
  0x1e   : > { %s97_s17 = ssub.s32 %s719_s12, %s803_s15  ;;  %p110_p10 = scmp.ne.s32.totalorder %s715_s11, %s711_s10 }
  0x1f   : > { %p98_p11 = scmp.eq.s32.totalorder %s97_s17, 0  ;;  %p111_p12 = scmp.eq.s32.totalorder %s799_s13, 1 }
  0x20   : > { %p116_p13 = scmp.ne.s32.totalorder %s711_s10, %s707_s1  ;;  %p117_p0 = scmp.eq.s32.totalorder %s533_s14, 1 }
  0x21   : > { %s814_s18 = scalar_select %p98_p11, %s715_s11, %s100_s16  }
  0x22   : > { %p816_p1 = por %p111_p12, %p110_p10  ;;  %p820_p2 = por %p117_p0, %p116_p13 }
  0x23   : > { %p535_p3 = scmp.ge.s32.totalorder %s719_s12, 1  ;;  %p144_p4 = scmp.lt.s32.totalorder %s719_s12, 3 }
  0x25   : > { %p145_p5 = pnand %p535_p3, %p144_p4 }
  0x26   : > { %s911_s21 = sand.u32 (!%p145_p5), 1, %s711_s10   ;;  %s537_s22 = sshll.u32 (!%p145_p5), %s799_s13, 3 }
  0x27   : > { %148 = sbr.rel (%p145_p5) target bundleno = 266 (0x10a), region = 32  ;;  %s830_s23 = sshll.u32 (!%p145_p5), %s911_s21, 3 }
  0x28   : > { %s721_s25 = smov (!%p145_p5), 0  }
  0x2e LB: >> { %s170_s26 = sadd.s32 %s723_s25, %s537_s22  ;;  %s174_s9 = scalar_lea.vmem [#allocation2], %s723_s25  ;;  %s723_s25 = sphi %s721_s25, %s169_s25  }
  0x2f   : >> { %s171_s27 = sld [smem:[#allocation6 + %s170_s26]]  ;;  %s175_s0 = scalar_lea.sflag [#allocation4], %s723_s25 }
  0x30   : >> { %s172_s28 = sld [smem:[#allocation7 + %s170_s26]] }
  0x35   : >> { %s173_s8 = scalar_lea.vmem %s904_s2, %s171_s27 }
  0x36   : >> { %v193_v0 = vld [vmem:[%s173_s8] sm:$0x1] }
  0x37   : >> { %194 = vst [vmem:[%s174_s9] sm:$0x1] %v193_v0 }
  0x38   : >> { %219 = vsyncadd %s175_s0, 16  ;;  %s220_s17 = scalar_lea.vmem %s905_s3, %s172_s28  ;;  %s478_s21 = scalar_lea.sflag %s175_s0, 8 [#allocation4] }
  0x39   : >> { %v241_v1 = vld [vmem:[%s220_s17] sm:$0x1]  ;;  %s221_s24 = scalar_lea.vmem [#allocation3], %s723_s25 }
  0x3a   : >> { %242 = vst [vmem:[%s221_s24] sm:$0x1] %v241_v1 }
  0x3b   : >> { %267 = vsyncadd %s478_s21, 16  ;;  %s169_s25 = sadd.s32 1, %s723_s25  }
  0x3c   : >> { %p166_p6 = scmp.ge.s32.totalorder %s169_s25, 8  }
  0x3d   : > { %v538_v2 = vld [vmem:[%s907_s5] ss:$0 sm:$0xff] (%p166_p6)  ;;  %s725_s8 = smov (%p166_p6), 0  }
  0x3e   : > { %168 = sbr.rel (!%p166_p6) target bundleno = 46 (0x2e), region = 181  ;;  %v539_v3 = vld [vmem:[%s908_s6] ss:$0 sm:$0xff] (%p166_p6) }
  0x45 LB: >> { %s276_s28 = scalar_lea.sflag [#allocation4], %s727_s8  ;;  %s727_s8 = sphi %s725_s8, %s275_s8  }
  0x46   : >> { %697 = dma.done.wait %s276_s28, 16 }
  0x47   : >> { %698 = vsyncadd %s276_s28, 4294967280  ;;  %s483_s21 = scalar_lea.sflag %s276_s28, 8 [#allocation4] }
  0x48   : >> { %699 = dma.done.wait %s483_s21, 16 }
  0x49   : >> { %700 = vsyncadd %s483_s21, 4294967280  ;;  %s275_s8 = sadd.s32 1, %s727_s8  }
  0x4a   : >> { %p272_p7 = scmp.ge.s32.totalorder %s275_s8, 8  }
  0x4b   : > { %v284_v4 = vld [vmem:[#allocation2] sm:$0xff] (%p272_p7)  ;;  %v285_v5 = vld [vmem:[#allocation3] sm:$0xff] (%p272_p7)  ;;  %vm289_vm0 = vcmask (%p272_p7), 261120   ;;  %s541_s25 = sshll.u32 (%p272_p7), %s799_s13, 7  ;;  %s914_s9 = scalar_lea.vmem (%p272_p7), [#allocation8], %s830_s23 }
  0x4c   : > { %274 = sbr.rel (!%p272_p7) target bundleno = 69 (0x45), region = 192  ;;  %v287_v6 = vld [vmem:[%s906_s4] sm:$0xff] (%p272_p7)  ;;  %v286_v7 = vadd.f32 (%p272_p7), %v285_v5, %v284_v4  ;;  %s335_s0 = sshll.u32 (%p272_p7), %s914_s9, 4  ;;  %s858_s0 = int_to_ptr.vmem [resolvable:$true] %s335_s0 }
  0x4d   : > { %s856_s17 = scalar_lea.hbm (%p272_p7), %s909_s7, %s541_s25  ;;  %s915_s26 = smov (%p272_p7), %s914_s9 }
  0x4e   : > { %v288_v8 = vadd.f32 (%p272_p7), %v287_v6, %v286_v7  ;;  %s916_s27 = sand.u32 (%p272_p7), 1, %s711_s10   ;;  %s643_s13 = scalar_lea.vmem (%p272_p7), %s858_s0, 128 }
  0x4f   : > { %s322_s29 = scalar_lea.sflag (%p272_p7), [#allocation9], %s916_s27  ;;  %p644_p8 = scmp.ne.s32.totalorder (%p272_p7), %s858_s0, %s643_s13 }
  0x50   : > { %v290_v9 = vsel (%p272_p7), %vm289_vm0, %v288_v8, 0.0  ;;  %v294_v10 = vmul.f32 (%p272_p7), %v288_v8, %v288_v8  ;;  %s731_s30 = smov (%p272_p7), [#allocation8]  }
  0x51   : > { %291 = vadd.xlane.f32.xlu0 (%p272_p7), %v290_v9  ;;  %p645_p9 = pnand (%p272_p7), %p644_p8, %p816_p1  ;;  %s647_s8 = sshll.u32 (%p272_p7), %s731_s30, 4  ;;  %s648_s8 = int_to_ptr.vmem [resolvable:$false] %s647_s8 }
  0x52   : > { %v295_v11 = vsel (%p272_p7), %vm289_vm0, %v294_v10, 0.0  ;;  %s649_s28 = scalar_lea.vmem (%p272_p7), %s648_s8, 256  ;;  %p650_p11 = scmp.lt.s32.totalorder (%p272_p7), %s858_s0, %s648_s8 }
  0x53   : > { %p646_p10 = pneg %p645_p9  ;;  %p651_p12 = scmp.lt.s32.totalorder %s649_s28, %s643_s13 }
  0x55   : > { %296 = vadd.xlane.f32.xlu0 %v295_v11  ;;  %p652_p13 = por %p651_p12, %p650_p11 }
  0x57   : > { %p653_p0 = pnand %p652_p13, %p646_p10 }
  0xde   : > { %v292_v12 = vpop.xlane.xlu0 %291 }
  0xdf   : > { %v293_v13 = vmul.f32 0.03125, %v292_v12 }
  0xe1   : > { %v299_v15 = vmul.f32 %v293_v13, %v293_v13  ;;  %v302_v20 = vsub.f32 %v288_v8, %v293_v13 }
  0xe2   : > { %v297_v14 = vpop.xlane.xlu0 %296 }
  0xe3   : > { %v298_v16 = vmul.f32 0.03125, %v297_v14 }
  0xe5   : > { %v300_v17 = vsub.f32 %v298_v16, %v299_v15 }
  0xe7   : > { %v301_v18 = vmax.f32 %v300_v17, 0.0 }
  0xe9   : > { %v303_v19 = vadd.f32 1e-12, %v301_v18 }
  0xeb   : > { %617 = vrsqrt.f32 %v303_v19 }
  0xf5   : > { %v618_v21 = vpop.eup %617 }
  0xf6   : > { %v305_v22 = vmul.f32 %v618_v21, %v302_v20 }
  0xf8   : > { %v312_v23 = vmul.f32 %v538_v2, %v305_v22 }
  0xfa   : > { %v319_v24 = vadd.f32 %v539_v3, %v312_v23 }
  0xfc   : > { %320 = vst.msk [vmem:[%s915_s26] sm:$0xff] %vm289_vm0, %v319_v24 }
  0xfd   : > { %656 = shalt.err (!%p653_p0)
}
  0xfe   : > { %s657_s23 = scalar_lea.hbm %s856_s17, 128  ;;  %s661_s24 = scalar_lea.hbm %s909_s7, 256 }
  0xff   : > { %p658_p3 = scmp.ne.s32.totalorder %s856_s17, %s657_s23  ;;  %p662_p6 = scmp.lt.u32.totalorder %s856_s17, %s909_s7 }
 0x100   : > { %p663_p7 = scmp.lt.u32.totalorder %s661_s24, %s657_s23  ;;  %p665_p9 = scmp.lt.u32.totalorder %s657_s23, %s856_s17 }
 0x101   : > { %p659_p4 = pnand %p658_p3, %p816_p1 }
 0x102   : > { %p664_p8 = por %p663_p7, %p662_p6 }
 0x103   : > { %p660_p5 = pneg %p659_p4 }
 0x104   : > { %p666_p10 = por %p665_p9, %p664_p8 }
 0x106   : > { %p667_p11 = pnand %p666_p10, %p660_p5 }
 0x108   : > { %670 = shalt.err (!%p667_p11)
}
 0x109   : > { %560 = dma.vmem_to_hbm [thread:$0]  (%p816_p1), %s858_s0, 128, %s856_s17, %s322_s29  }
 0x10a PF: > { %p566_p12 = scmp.ge.s32.totalorder %s719_s12, 2  ;;  %s347_s14 = sand.u32 1, %s707_s1  }
 0x10b   : > { %s348_s16 = scalar_lea.sflag [#allocation9], %s347_s14 }
 0x10c   : > { %p563_p13 = pnand %p566_p12, %p820_p2 }
 0x10e   : > { %702 = dma.done.wait (!%p563_p13), %s348_s16, 128  }
 0x10f   : > { %704 = vsyncadd (!%p563_p13), %s348_s16, 4294967168  ;;  %p27_p0 = scmp.ge.s32.totalorder %s803_s15, 4   ;;  %s917_s1 = smov %s711_s10 }
 0x110   : > { %s918_s10 = smov %s715_s11  ;;  %s919_s11 = smov %s814_s18 }
 0x111   : > { %s920_s12 = smov %s803_s15  ;;  %29 = sbr.rel (!%p27_p0) target bundleno = 28 (0x1c), region = 203 }
 0x118   :  { %353 = vsyncpa [#allocation9], 1 }
 0x119   :  { %355 = vsyncpa [#allocation9 + $0x1], 1 }
 0x11a   :  { %356 = vsyncmov [#allocation4] }
 0x11d   :  { %s357_s12 = vpop.sfrf %356 }
 0x11e   :  { %p544_p1 = scmp.ne.s32.totalorder %s357_s12, 0 }
 0x120   :  { %361 = shalt.err (%p544_p1)  }
 0x121   :  { %363 = vsyncmov [#allocation4 + $0x1] }
 0x124   :  { %s364_s19 = vpop.sfrf %363 }
 0x125   :  { %p545_p2 = scmp.ne.s32.totalorder %s364_s19, 0 }
 0x127   :  { %368 = shalt.err (%p545_p2)  }
 0x128   :  { %370 = vsyncmov [#allocation4 + $0x2] }
 0x12b   :  { %s371_s20 = vpop.sfrf %370 }
 0x12c   :  { %p546_p3 = scmp.ne.s32.totalorder %s371_s20, 0 }
 0x12e   :  { %375 = shalt.err (%p546_p3)  }
 0x12f   :  { %377 = vsyncmov [#allocation4 + $0x3] }
 0x132   :  { %s378_s0 = vpop.sfrf %377 }
 0x133   :  { %p547_p4 = scmp.ne.s32.totalorder %s378_s0, 0 }
 0x135   :  { %382 = shalt.err (%p547_p4)  }
 0x136   :  { %384 = vsyncmov [#allocation4 + $0x4] }
 0x139   :  { %s385_s15 = vpop.sfrf %384 }
 0x13a   :  { %p548_p5 = scmp.ne.s32.totalorder %s385_s15, 0 }
 0x13c   :  { %389 = shalt.err (%p548_p5)  }
 0x13d   :  { %391 = vsyncmov [#allocation4 + $0x5] }
 0x140   :  { %s392_s2 = vpop.sfrf %391 }
 0x141   :  { %p549_p6 = scmp.ne.s32.totalorder %s392_s2, 0 }
 0x143   :  { %396 = shalt.err (%p549_p6)  }
 0x144   :  { %398 = vsyncmov [#allocation4 + $0x6] }
 0x147   :  { %s399_s3 = vpop.sfrf %398 }
 0x148   :  { %p550_p7 = scmp.ne.s32.totalorder %s399_s3, 0 }
 0x14a   :  { %403 = shalt.err (%p550_p7)  }
 0x14b   :  { %405 = vsyncmov [#allocation4 + $0x7] }
 0x14e   :  { %s406_s4 = vpop.sfrf %405 }
 0x14f   :  { %p551_p8 = scmp.ne.s32.totalorder %s406_s4, 0 }
 0x151   :  { %410 = shalt.err (%p551_p8)  }
 0x152   :  { %412 = vsyncmov [#allocation4 + $0x8] }
 0x155   :  { %s413_s5 = vpop.sfrf %412 }
 0x156   :  { %p552_p9 = scmp.ne.s32.totalorder %s413_s5, 0 }
 0x158   :  { %417 = shalt.err (%p552_p9)  }
 0x159   :  { %419 = vsyncmov [#allocation4 + $0x9] }
 0x15c   :  { %s420_s6 = vpop.sfrf %419 }
 0x15d   :  { %p553_p10 = scmp.ne.s32.totalorder %s420_s6, 0 }
 0x15f   :  { %424 = shalt.err (%p553_p10)  }
 0x160   :  { %426 = vsyncmov [#allocation4 + $0xa] }
 0x163   :  { %s427_s7 = vpop.sfrf %426 }
 0x164   :  { %p554_p11 = scmp.ne.s32.totalorder %s427_s7, 0 }
 0x166   :  { %431 = shalt.err (%p554_p11)  }
 0x167   :  { %433 = vsyncmov [#allocation4 + $0xb] }
 0x16a   :  { %s434_s1 = vpop.sfrf %433 }
 0x16b   :  { %p555_p12 = scmp.ne.s32.totalorder %s434_s1, 0 }
 0x16d   :  { %438 = shalt.err (%p555_p12)  }
 0x16e   :  { %440 = vsyncmov [#allocation4 + $0xc] }
 0x171   :  { %s441_s10 = vpop.sfrf %440 }
 0x172   :  { %p556_p13 = scmp.ne.s32.totalorder %s441_s10, 0 }
 0x174   :  { %445 = shalt.err (%p556_p13)  }
 0x175   :  { %447 = vsyncmov [#allocation4 + $0xd] }
 0x178   :  { %s448_s11 = vpop.sfrf %447 }
 0x179   :  { %p557_p0 = scmp.ne.s32.totalorder %s448_s11, 0 }
 0x17b   :  { %452 = shalt.err (%p557_p0)  }
 0x17c   :  { %454 = vsyncmov [#allocation4 + $0xe] }
 0x17f   :  { %s455_s18 = vpop.sfrf %454 }
 0x180   :  { %p558_p1 = scmp.ne.s32.totalorder %s455_s18, 0 }
 0x182   :  { %459 = shalt.err (%p558_p1)  }
 0x183   :  { %461 = vsyncmov [#allocation4 + $0xf] }
 0x186   :  { %s462_s17 = vpop.sfrf %461 }
 0x187   :  { %p559_p2 = scmp.ne.s32.totalorder %s462_s17, 0 }
 0x189   :  { %466 = shalt.err (%p559_p2)  }

</bundles_post_ra>
